<compile_context>
chip_gen: v7x
topology: tpu7x:2x2x1
jax: 0.10.0
libtpu: 0.0.40
codegen_flags: <defaults>
</compile_context>

<pallas_src>
import math
import functools

import jax
import jax.numpy as jnp
from jax.experimental import pallas as pl
from jax.experimental.pallas import tpu as pltpu


# --------------------------------------------------------------------------
# Kernels
# --------------------------------------------------------------------------
def _xw_kernel(x_ref, w_ref, o_ref, acc_ref):
    """Folded feature transform: (B*N_pad, Fin_pad) @ (Fin_pad, Fout_pad)."""
    @pl.when(pl.program_id(2) == 0)
    def _():
        acc_ref[...] = jnp.zeros_like(acc_ref)

    acc_ref[...] += jnp.dot(x_ref[...], w_ref[...],
                            preferred_element_type=jnp.float32)

    @pl.when(pl.program_id(2) == pl.num_programs(2) - 1)
    def _():
        o_ref[...] = acc_ref[...].astype(o_ref.dtype)


def _adj_bmm_kernel(adj_ref, xw_ref, o_ref, acc_ref):
    """Tiled bmm(adj, xw): adj (1,TM,TK) @ xw (1,TK,Fout_pad) with K-accum."""
    k = pl.program_id(2)

    @pl.when(k == 0)
    def _():
        acc_ref[...] = jnp.zeros_like(acc_ref)

    acc_ref[...] += jnp.dot(adj_ref[0], xw_ref[0],
                            preferred_element_type=jnp.float32)

    @pl.when(k == pl.num_programs(2) - 1)
    def _():
        o_ref[0] = acc_ref[...].astype(o_ref.dtype)


def _adj_bmm_kernel_d(adj_ref, xw_ref, d_ref, o_ref, acc_ref):
    """Same as above, with fused output * (1/D) in the epilogue."""
    k = pl.program_id(2)

    @pl.when(k == 0)
    def _():
        acc_ref[...] = jnp.zeros_like(acc_ref)

    acc_ref[...] += jnp.dot(adj_ref[0], xw_ref[0],
                            preferred_element_type=jnp.float32)

    @pl.when(k == pl.num_programs(2) - 1)
    def _():
        # approx=True -> EUP vrcp slot (otherwise idle here), effectively free.
        inv_d = pl.reciprocal(d_ref[0], approx=True)      # (TM, 1) f32
        o_ref[0] = (acc_ref[...] * inv_d).astype(o_ref.dtype)


# --------------------------------------------------------------------------
# Wrapper
# --------------------------------------------------------------------------
def _round_up(v, m):
    return (v + m - 1) // m * m


def _pick_tile(padded_dim, preferred=256):
    # padded_dim is a multiple of 128.  256-multiples feed the 256x256 MXU of
    # v6e/v7x per vmatmul cadence; 128 matches v5e's 4x128^2 geometry and is
    # the fallback whenever 256 does not divide the padded dimension.
    return preferred if padded_dim % preferred == 0 else 128


@functools.partial(jax.jit, static_argnames=("compute_dtype",))
def graph_conv(x, adj, weight, D=None, *, compute_dtype=jnp.float32):
    """Pallas GraphConv forward.

    x:      (B, N, Fin) or (N, Fin) float32
    adj:    (B, N, N)   or (N, N)   float32 (dense)
    weight: (Fin, Fout) float32
    D:      optional (B, N, 1) / (B, N) (or unbatched) float32, per-row scale
    compute_dtype: dtype fed to the MXU (f32 or bf16); accumulation is f32.
    returns (B, N, Fout) (or (N, Fout) for 2-D input) in x.dtype
    """
    squeeze_batch = (x.ndim == 2)
    if squeeze_batch:
        x = x[None]
        adj = adj[None]
        if D is not None:
            D = D[None]
    if D is not None and D.ndim == 2:
        D = D[..., None]

    B, N, Fin = x.shape
    Fout = weight.shape[1]
    out_dtype = x.dtype

    # ---- pad to lane/sublane friendly shapes (lane-dense blocks) ---------
    n_pad = _round_up(N, 128)        # N is both the row dim and the K dim
    fin_pad = _round_up(Fin, 128)
    fout_pad = _round_up(Fout, 128)

    x_p = jnp.pad(x, ((0, 0), (0, n_pad - N), (0, fin_pad - Fin)))
    adj_p = jnp.pad(adj, ((0, 0), (0, n_pad - N), (0, n_pad - N)))
    w_p = jnp.pad(weight, ((0, fin_pad - Fin), (0, fout_pad - Fout)))

    x_p = x_p.astype(compute_dtype)
    adj_p = adj_p.astype(compute_dtype)
    w_p = w_p.astype(compute_dtype)
    itemsize = jnp.dtype(compute_dtype).itemsize

    # ---- step 1: folded feature transform  xw = (B*N_pad, Fin) @ W -------
    M = B * n_pad
    x_2d = x_p.reshape(M, fin_pad)
    tm_x = _pick_tile(M)
    tn_x = _pick_tile(fout_pad)
    tk_x = _pick_tile(fin_pad)

    xw_2d = pl.pallas_call(
        _xw_kernel,
        out_shape=jax.ShapeDtypeStruct((M, fout_pad), compute_dtype),
        grid_spec=pltpu.PrefetchScalarGridSpec(
            num_scalar_prefetch=0,
            grid=(M // tm_x, fout_pad // tn_x, fin_pad // tk_x),
            in_specs=[pl.BlockSpec((tm_x, tk_x), lambda i, j, k: (i, k)),
                      pl.BlockSpec((tk_x, tn_x), lambda i, j, k: (k, j))],
            out_specs=pl.BlockSpec((tm_x, tn_x), lambda i, j, k: (i, j)),
            scratch_shapes=[pltpu.VMEM((tm_x, tn_x), jnp.float32)]),
        compiler_params=pltpu.CompilerParams(
            dimension_semantics=("parallel", "parallel", "arbitrary")),
        cost_estimate=pl.CostEstimate(
            flops=2 * M * fin_pad * fout_pad,
            transcendentals=0,
            bytes_accessed=(M * fin_pad + fin_pad * fout_pad) * itemsize
                           + M * fout_pad * itemsize),
    )(x_2d, w_p)
    xw_p = xw_2d.reshape(B, n_pad, fout_pad)

    # ---- step 2: tiled bmm(adj, xw) (+ optional 1/D) ----------------------
    tm = _pick_tile(n_pad)           # row tile of adj / output
    tk = _pick_tile(n_pad)           # contraction tile (columns of adj)

    adj_spec = pl.BlockSpec((1, tm, tk), lambda b, i, k: (b, i, k))
    xw_spec = pl.BlockSpec((1, tk, fout_pad), lambda b, i, k: (b, k, 0))
    out_spec = pl.BlockSpec((1, tm, fout_pad), lambda b, i, k: (b, i, 0))
    scratch = [pltpu.VMEM((tm, fout_pad), jnp.float32)]
    grid = (B, n_pad // tm, n_pad // tk)
    cparams = pltpu.CompilerParams(
        dimension_semantics=("parallel", "parallel", "arbitrary"))
    cost = pl.CostEstimate(
        flops=2 * B * n_pad * n_pad * fout_pad,
        transcendentals=(B * n_pad if D is not None else 0),
        bytes_accessed=(B * n_pad * n_pad + B * n_pad * fout_pad) * itemsize
                       + B * n_pad * fout_pad * 4
                       + (B * n_pad * 4 if D is not None else 0))
    out_shape = jax.ShapeDtypeStruct((B, n_pad, fout_pad), jnp.float32)

    if D is None:
        out_p = pl.pallas_call(
            _adj_bmm_kernel,
            out_shape=out_shape,
            grid_spec=pltpu.PrefetchScalarGridSpec(
                num_scalar_prefetch=0,
                grid=grid,
                in_specs=[adj_spec, xw_spec],
                out_specs=out_spec,
                scratch_shapes=scratch),
            compiler_params=cparams,
            cost_estimate=cost,
        )(adj_p, xw_p)
    else:
        # D kept f32; padded rows get 1.0 so the approx reciprocal never sees 0.
        # (The (1, TM, 1) block pads its lane dim, but D traffic is negligible
        #  next to the adj stream.)
        d_p = jnp.pad(D.astype(jnp.float32),
                      ((0, 0), (0, n_pad - N), (0, 0)),
                      constant_values=1.0)
        d_spec = pl.BlockSpec((1, tm, 1), lambda b, i, k: (b, i, 0))
        out_p = pl.pallas_call(
            _adj_bmm_kernel_d,
            out_shape=out_shape,
            grid_spec=pltpu.PrefetchScalarGridSpec(
                num_scalar_prefetch=0,
                grid=grid,
                in_specs=[adj_spec, xw_spec, d_spec],
                out_specs=out_spec,
                scratch_shapes=scratch),
            compiler_params=cparams,
            cost_estimate=cost,
        )(adj_p, xw_p, d_p)

    out = out_p[:, :N, :Fout].astype(out_dtype)
    if squeeze_batch:
        out = out[0]
    return out


def init_graph_conv_weight(key, in_features, out_features, bias=False):
    """Deterministic re-implementation of GraphConv.reset_parameters."""
    stdv = 1.0 / math.sqrt(out_features)
    kw, kb = jax.random.split(key)
    weight = jax.random.uniform(
        kw, (in_features, out_features), dtype=jnp.float32,
        minval=-stdv, maxval=stdv)
    b = None
    if bias:
        b = jax.random.uniform(
            kb, (out_features,), dtype=jnp.float32, minval=-stdv, maxval=stdv)
    return weight, b


if __name__ == "__main__":
    key = jax.random.PRNGKey(0)
    k_x, k_adj, k_d, k_w = jax.random.split(key, 4)

    B, N, Fin, Fout = 2, 16, 32, 32

    x = jax.random.normal(k_x, (B, N, Fin), dtype=jnp.float32)
    adj = jax.random.uniform(k_adj, (B, N, N), dtype=jnp.float32)
    # D: positive per-node normalizer, broadcast over the feature dim.
    D = jax.random.uniform(k_d, (B, N, 1), dtype=jnp.float32,
                           minval=1.0, maxval=2.0)
    weight, _ = init_graph_conv_weight(k_w, Fin, Fout, bias=False)

    # Plain-JAX reference.
    ref = jnp.einsum("bij,bjf->bif", adj, jnp.einsum("bnf,fg->bng", x, weight))

    out_no_d = graph_conv(x, adj, weight)
    out_with_d = graph_conv(x, adj, weight, D)
    out_bf16 = graph_conv(x, adj, weight, D, compute_dtype=jnp.bfloat16)
    jax.block_until_ready((out_no_d, out_with_d, out_bf16))

    assert out_no_d.shape == (B, N, Fout)
    assert jnp.allclose(out_no_d, ref, atol=2e-3, rtol=2e-3)
    # approx reciprocal (EUP vrcp) -> slightly looser tolerance.
    assert jnp.allclose(out_with_d, ref / D, atol=1e-2, rtol=1e-2)
    # bf16 MXU inputs with f32 accumulation -> looser still.
    assert jnp.allclose(out_bf16.astype(jnp.float32), ref / D,
                        atol=1e-1, rtol=5e-2)

    print("KERNEL_OK")
</pallas_src>

<mosaic_0001>
module attributes {stable_mosaic.version = 11 : i64} {
  func.func @_xw_kernel(%arg0: i32, %arg1: i32, %arg2: i32, %arg3: memref<256x128xf32, #tpu.memory_space<vmem>>, %arg4: memref<128x128xf32, #tpu.memory_space<vmem>>, %arg5: memref<256x128xf32, #tpu.memory_space<vmem>>, %arg6: memref<256x128xf32, #tpu.memory_space<vmem>>) attributes {dimension_semantics = [#tpu.dimension_semantics<parallel>, #tpu.dimension_semantics<parallel>, #tpu.dimension_semantics<arbitrary>], iteration_bounds = array<i64: 1, 1, 1>, scalar_prefetch = 0 : i64, scratch_operands = 1 : i64, tpu.core_type = #tpu.core_type<tc>, window_params = [{transform_indices = @transform_0, window_bounds = array<i64: 256, 128>}, {transform_indices = @transform_1, window_bounds = array<i64: 128, 128>}, {transform_indices = @transform_2, window_bounds = array<i64: 256, 128>}]} {
    %c0_i32 = arith.constant 0 : i32
    %0 = arith.cmpi eq, %arg2, %c0_i32 : i32
    %1 = arith.extui %0 : i1 to i32
    %c0_i32_0 = arith.constant 0 : i32
    %2 = arith.cmpi ne, %1, %c0_i32_0 : i32
    scf.if %2 {
      %cst_10 = arith.constant 0.000000e+00 : f32
      %12 = vector.broadcast %cst_10 : f32 to vector<256x128xf32>
      %c0_11 = arith.constant 0 : index
      %c0_12 = arith.constant 0 : index
      %13 = vector.load %arg6[%c0_11, %c0_12] : memref<256x128xf32, #tpu.memory_space<vmem>>, vector<256x128xf32>
      tpu.vector_store %arg6[%c0_11, %c0_12], %12 {strides = array<i32>} : memref<256x128xf32, #tpu.memory_space<vmem>>, vector<256x128xf32>,
    } else {
    }
    %c0 = arith.constant 0 : index
    %c0_1 = arith.constant 0 : index
    %3 = vector.load %arg6[%c0, %c0_1] : memref<256x128xf32, #tpu.memory_space<vmem>>, vector<256x128xf32>
    %c0_2 = arith.constant 0 : index
    %c0_3 = arith.constant 0 : index
    %4 = vector.load %arg3[%c0_2, %c0_3] : memref<256x128xf32, #tpu.memory_space<vmem>>, vector<256x128xf32>
    %c0_4 = arith.constant 0 : index
    %c0_5 = arith.constant 0 : index
    %5 = vector.load %arg4[%c0_4, %c0_5] : memref<128x128xf32, #tpu.memory_space<vmem>>, vector<128x128xf32>
    %cst = arith.constant dense<0.000000e+00> : vector<256x128xf32>
    %6 = tpu.matmul %4, %5, %cst {dimension_numbers = #tpu.dot_dimension_numbers<[1], [0], [0], [1], [0, 0, 1, 1], [], []>} : vector<256x128xf32>, vector<128x128xf32>, vector<256x128xf32> -> vector<256x128xf32>
    %7 = arith.addf %3, %6 : vector<256x128xf32>
    %c0_6 = arith.constant 0 : index
    %c0_7 = arith.constant 0 : index
    %8 = vector.load %arg6[%c0_6, %c0_7] : memref<256x128xf32, #tpu.memory_space<vmem>>, vector<256x128xf32>
    tpu.vector_store %arg6[%c0_6, %c0_7], %7 {strides = array<i32>} : memref<256x128xf32, #tpu.memory_space<vmem>>, vector<256x128xf32>,
    %c0_i32_8 = arith.constant 0 : i32
    %9 = arith.cmpi eq, %arg2, %c0_i32_8 : i32
    %10 = arith.extui %9 : i1 to i32
    %c0_i32_9 = arith.constant 0 : i32
    %11 = arith.cmpi ne, %10, %c0_i32_9 : i32
    scf.if %11 {
      %c0_10 = arith.constant 0 : index
      %c0_11 = arith.constant 0 : index
      %12 = vector.load %arg6[%c0_10, %c0_11] : memref<256x128xf32, #tpu.memory_space<vmem>>, vector<256x128xf32>
      %c0_12 = arith.constant 0 : index
      %c0_13 = arith.constant 0 : index
      %13 = vector.load %arg5[%c0_12, %c0_13] : memref<256x128xf32, #tpu.memory_space<vmem>>, vector<256x128xf32>
      tpu.vector_store %arg5[%c0_12, %c0_13], %12 {strides = array<i32>} : memref<256x128xf32, #tpu.memory_space<vmem>>, vector<256x128xf32>,
    } else {
    }
    return
  }
  func.func @transform_0(%arg0: i32, %arg1: i32, %arg2: i32) -> (i32, i32) {
    %c0_i32 = arith.constant 0 : i32
    return %arg0, %arg2 : i32, i32
  }
  func.func @transform_1(%arg0: i32, %arg1: i32, %arg2: i32) -> (i32, i32) {
    %c0_i32 = arith.constant 0 : i32
    return %arg2, %arg1 : i32, i32
  }
  func.func @transform_2(%arg0: i32, %arg1: i32, %arg2: i32) -> (i32, i32) {
    %c0_i32 = arith.constant 0 : i32
    return %arg0, %arg1 : i32, i32
  }
}

module attributes {stable_mosaic.version = 11 : i64} {
  func.func @_adj_bmm_kernel(%arg0: i32, %arg1: i32, %arg2: i32, %arg3: memref<1x128x128xf32, #tpu.memory_space<vmem>>, %arg4: memref<1x128x128xf32, #tpu.memory_space<vmem>>, %arg5: memref<1x128x128xf32, #tpu.memory_space<vmem>>, %arg6: memref<128x128xf32, #tpu.memory_space<vmem>>) attributes {dimension_semantics = [#tpu.dimension_semantics<parallel>, #tpu.dimension_semantics<parallel>, #tpu.dimension_semantics<arbitrary>], iteration_bounds = array<i64: 2, 1, 1>, scalar_prefetch = 0 : i64, scratch_operands = 1 : i64, tpu.core_type = #tpu.core_type<tc>, window_params = [{transform_indices = @transform_0, window_bounds = array<i64: 1, 128, 128>}, {transform_indices = @transform_1, window_bounds = array<i64: 1, 128, 128>}, {transform_indices = @transform_2, window_bounds = array<i64: 1, 128, 128>}]} {
    %c0_i32 = arith.constant 0 : i32
    %0 = arith.cmpi eq, %arg2, %c0_i32 : i32
    %1 = arith.extui %0 : i1 to i32
    %c0_i32_0 = arith.constant 0 : i32
    %2 = arith.cmpi ne, %1, %c0_i32_0 : i32
    scf.if %2 {
      %cst_12 = arith.constant 0.000000e+00 : f32
      %14 = vector.broadcast %cst_12 : f32 to vector<128x128xf32>
      %c0_13 = arith.constant 0 : index
      %c0_14 = arith.constant 0 : index
      %15 = vector.load %arg6[%c0_13, %c0_14] : memref<128x128xf32, #tpu.memory_space<vmem>>, vector<128x128xf32>
      tpu.vector_store %arg6[%c0_13, %c0_14], %14 {strides = array<i32>} : memref<128x128xf32, #tpu.memory_space<vmem>>, vector<128x128xf32>,
    } else {
    }
    %c0 = arith.constant 0 : index
    %c0_1 = arith.constant 0 : index
    %3 = vector.load %arg6[%c0, %c0_1] : memref<128x128xf32, #tpu.memory_space<vmem>>, vector<128x128xf32>
    %c0_2 = arith.constant 0 : index
    %c0_3 = arith.constant 0 : index
    %c0_4 = arith.constant 0 : index
    %4 = vector.load %arg3[%c0_2, %c0_3, %c0_4] : memref<1x128x128xf32, #tpu.memory_space<vmem>>, vector<1x128x128xf32>
    %5 = vector.shape_cast %4 : vector<1x128x128xf32> to vector<128x128xf32>
    %c0_5 = arith.constant 0 : index
    %c0_6 = arith.constant 0 : index
    %c0_7 = arith.constant 0 : index
    %6 = vector.load %arg4[%c0_5, %c0_6, %c0_7] : memref<1x128x128xf32, #tpu.memory_space<vmem>>, vector<1x128x128xf32>
    %7 = vector.shape_cast %6 : vector<1x128x128xf32> to vector<128x128xf32>
    %cst = arith.constant dense<0.000000e+00> : vector<128x128xf32>
    %8 = tpu.matmul %5, %7, %cst {dimension_numbers = #tpu.dot_dimension_numbers<[1], [0], [0], [1], [0, 0, 1, 1], [], []>} : vector<128x128xf32>, vector<128x128xf32>, vector<128x128xf32> -> vector<128x128xf32>
    %9 = arith.addf %3, %8 : vector<128x128xf32>
    %c0_8 = arith.constant 0 : index
    %c0_9 = arith.constant 0 : index
    %10 = vector.load %arg6[%c0_8, %c0_9] : memref<128x128xf32, #tpu.memory_space<vmem>>, vector<128x128xf32>
    tpu.vector_store %arg6[%c0_8, %c0_9], %9 {strides = array<i32>} : memref<128x128xf32, #tpu.memory_space<vmem>>, vector<128x128xf32>,
    %c0_i32_10 = arith.constant 0 : i32
    %11 = arith.cmpi eq, %arg2, %c0_i32_10 : i32
    %12 = arith.extui %11 : i1 to i32
    %c0_i32_11 = arith.constant 0 : i32
    %13 = arith.cmpi ne, %12, %c0_i32_11 : i32
    scf.if %13 {
      %c0_12 = arith.constant 0 : index
      %c0_13 = arith.constant 0 : index
      %14 = vector.load %arg6[%c0_12, %c0_13] : memref<128x128xf32, #tpu.memory_space<vmem>>, vector<128x128xf32>
      %c0_14 = arith.constant 0 : index
      %c0_15 = arith.constant 0 : index
      %c0_16 = arith.constant 0 : index
      %15 = vector.load %arg5[%c0_14, %c0_15, %c0_16] : memref<1x128x128xf32, #tpu.memory_space<vmem>>, vector<1x128x128xf32>
      %16 = vector.shape_cast %15 : vector<1x128x128xf32> to vector<128x128xf32>
      %17 = vector.shape_cast %14 : vector<128x128xf32> to vector<1x128x128xf32>
      tpu.vector_store %arg5[%c0_14, %c0_15, %c0_16], %17 {strides = array<i32>} : memref<1x128x128xf32, #tpu.memory_space<vmem>>, vector<1x128x128xf32>,
    } else {
    }
    return
  }
  func.func @transform_0(%arg0: i32, %arg1: i32, %arg2: i32) -> (i32, i32, i32) {
    %c0_i32 = arith.constant 0 : i32
    return %arg0, %arg1, %arg2 : i32, i32, i32
  }
  func.func @transform_1(%arg0: i32, %arg1: i32, %arg2: i32) -> (i32, i32, i32) {
    %c0_i32 = arith.constant 0 : i32
    %c0_i32_0 = arith.constant 0 : i32
    return %arg0, %arg2, %c0_i32 : i32, i32, i32
  }
  func.func @transform_2(%arg0: i32, %arg1: i32, %arg2: i32) -> (i32, i32, i32) {
    %c0_i32 = arith.constant 0 : i32
    %c0_i32_0 = arith.constant 0 : i32
    return %arg0, %arg1, %c0_i32 : i32, i32, i32
  }
}

</mosaic_0001>

<bundles_post_ra>
// kernel: graph_conv.2
= control target key start
LH: loop header
LB: loop body
LE: loop exit
PB: predicated region body
PF: predicated region fallthrough
CT: control target
= control target key end

     0   :  { %s918_s1 = inlined_call_operand.vmem [shape: f32[128,128], index: 1, kind: input, shape index: {}]   ;;  %s919_s0 = inlined_call_operand.vmem [shape: f32[256,128], index: 0, kind: input, shape index: {}]   ;;  %s920_s2 = inlined_call_operand.vmem [shape: f32[256,128], index: 2, kind: output, shape index: {}]  }
   0x1   :  { %v111_v0 = vld [vmem:[%s918_s1] sm:$0xff]  ;;  %v112_v1 = vld [vmem:[%s918_s1 + $0x8] sm:$0xff]  ;;  %v113_v2 = vld [vmem:[%s918_s1 + $0x10] sm:$0xff] }
   0x2   :  { %v615_v3 = vpack.c.bf16 %v112_v1, %v111_v0  ;;  %v114_v4 = vld [vmem:[%s918_s1 + $0x18] sm:$0xff]  ;;  %v115_v6 = vld [vmem:[%s918_s1 + $0x20] sm:$0xff]  ;;  %v116_v7 = vld [vmem:[%s918_s1 + $0x28] sm:$0xff] }
   0x3   :  { %v619_v5 = vpack.c.bf16 %v114_v4, %v113_v2  ;;  %v623_v8 = vpack.c.bf16 %v116_v7, %v115_v6  ;;  %v79_v9 = vld [vmem:[%s919_s0] sm:$0xff]  ;;  %v117_v11 = vld [vmem:[%s918_s1 + $0x30] sm:$0xff]  ;;  %v118_v12 = vld [vmem:[%s918_s1 + $0x38] sm:$0xff] }
   0x4   :  { %616 = vmatprep.subr.bf16.mxu0 %v615_v3  ;;  %647 = vmatprep.subr.bf16.mxu1 %v615_v3  ;;  %v95_v10 = vld [vmem:[%s919_s0 + $0x80] sm:$0xff]  ;;  %v627_v13 = vpack.c.bf16 %v118_v12, %v117_v11  ;;  %v120_v15 = vld [vmem:[%s918_s1 + $0x48] sm:$0xff]  ;;  %v121_v17 = vld [vmem:[%s918_s1 + $0x50] sm:$0xff] }
   0x5   :  { %618 = vmatpush3.bf16.msra.mxu0 %v615_v3  ;;  %655 = vmatpush3.bf16.msra.mxu1 %v615_v3  ;;  %v119_v14 = vld [vmem:[%s918_s1 + $0x40] sm:$0xff]  ;;  %v122_v18 = vld [vmem:[%s918_s1 + $0x58] sm:$0xff]  ;;  %v124_v21 = vld [vmem:[%s918_s1 + $0x68] sm:$0xff] }
   0x6   :  { %620 = vmatprep.subr.bf16.mxu0 %v619_v5  ;;  %648 = vmatprep.subr.bf16.mxu1 %v619_v5  ;;  %v631_v16 = vpack.c.bf16 %v120_v15, %v119_v14  ;;  %v635_v19 = vpack.c.bf16 %v122_v18, %v121_v17  ;;  %v123_v20 = vld [vmem:[%s918_s1 + $0x60] sm:$0xff]  ;;  %v125_v23 = vld [vmem:[%s918_s1 + $0x70] sm:$0xff]  ;;  %v126_v24 = vld [vmem:[%s918_s1 + $0x78] sm:$0xff] }
   0x7   :  { %567 = vmatprep.mubr.f32.mxu0 %v79_v9  ;;  %591 = vmatprep.mubr.f32.mxu1 %v95_v10  ;;  %v639_v22 = vpack.c.bf16 %v124_v21, %v123_v20  ;;  %v643_v25 = vpack.c.bf16 %v126_v24, %v125_v23  ;;  %v80_v26 = vld [vmem:[%s919_s0 + $0x8] sm:$0xff]  ;;  %v81_v28 = vld [vmem:[%s919_s0 + $0x10] sm:$0xff]  ;;  %v82_v30 = vld [vmem:[%s919_s0 + $0x18] sm:$0xff] }
   0x8   :  { %v96_v27 = vld [vmem:[%s919_s0 + $0x88] sm:$0xff]  ;;  %v97_v29 = vld [vmem:[%s919_s0 + $0x90] sm:$0xff]  ;;  %v98_v31 = vld [vmem:[%s919_s0 + $0x98] sm:$0xff] }
   0x9   :  { %622 = vmatpush3.bf16.msra.mxu0 %v619_v5  ;;  %656 = vmatpush3.bf16.msra.mxu1 %v619_v5  ;;  %v83_v32 = vld [vmem:[%s919_s0 + $0x20] sm:$0xff]  ;;  %v84_v34 = vld [vmem:[%s919_s0 + $0x28] sm:$0xff]  ;;  %v85_v36 = vld [vmem:[%s919_s0 + $0x30] sm:$0xff] }
   0xa   :  { %624 = vmatprep.subr.bf16.mxu0 %v623_v8  ;;  %649 = vmatprep.subr.bf16.mxu1 %v623_v8  ;;  %v99_v33 = vld [vmem:[%s919_s0 + $0xa0] sm:$0xff]  ;;  %v100_v35 = vld [vmem:[%s919_s0 + $0xa8] sm:$0xff]  ;;  %v101_v37 = vld [vmem:[%s919_s0 + $0xb0] sm:$0xff] }
   0xb   :  { %v86_v38 = vld [vmem:[%s919_s0 + $0x38] sm:$0xff]  ;;  %v87_v40 = vld [vmem:[%s919_s0 + $0x40] sm:$0xff]  ;;  %v88_v42 = vld [vmem:[%s919_s0 + $0x48] sm:$0xff] }
   0xc   :  { %v102_v39 = vld [vmem:[%s919_s0 + $0xb8] sm:$0xff]  ;;  %v103_v41 = vld [vmem:[%s919_s0 + $0xc0] sm:$0xff]  ;;  %v104_v43 = vld [vmem:[%s919_s0 + $0xc8] sm:$0xff] }
   0xd   :  { %626 = vmatpush3.bf16.msra.mxu0 %v623_v8  ;;  %657 = vmatpush3.bf16.msra.mxu1 %v623_v8  ;;  %v89_v44 = vld [vmem:[%s919_s0 + $0x50] sm:$0xff]  ;;  %v90_v46 = vld [vmem:[%s919_s0 + $0x58] sm:$0xff]  ;;  %v91_v48 = vld [vmem:[%s919_s0 + $0x60] sm:$0xff] }
   0xe   :  { %628 = vmatprep.subr.bf16.mxu0 %v627_v13  ;;  %650 = vmatprep.subr.bf16.mxu1 %v627_v13  ;;  %v105_v45 = vld [vmem:[%s919_s0 + $0xd0] sm:$0xff]  ;;  %v106_v47 = vld [vmem:[%s919_s0 + $0xd8] sm:$0xff]  ;;  %v107_v49 = vld [vmem:[%s919_s0 + $0xe0] sm:$0xff] }
   0xf   :  { %v92_v50 = vld [vmem:[%s919_s0 + $0x68] sm:$0xff]  ;;  %v93_v52 = vld [vmem:[%s919_s0 + $0x70] sm:$0xff]  ;;  %v94_v54 = vld [vmem:[%s919_s0 + $0x78] sm:$0xff] }
  0x10   :  { %v108_v51 = vld [vmem:[%s919_s0 + $0xe8] sm:$0xff]  ;;  %v109_v53 = vld [vmem:[%s919_s0 + $0xf0] sm:$0xff]  ;;  %v110_v55 = vld [vmem:[%s919_s0 + $0xf8] sm:$0xff] }
  0x11   :  { %630 = vmatpush3.bf16.msra.mxu0 %v627_v13  ;;  %658 = vmatpush3.bf16.msra.mxu1 %v627_v13 }
  0x12   :  { %632 = vmatprep.subr.bf16.mxu0 %v631_v16  ;;  %651 = vmatprep.subr.bf16.mxu1 %v631_v16 }
  0x15   :  { %634 = vmatpush3.bf16.msra.mxu0 %v631_v16  ;;  %659 = vmatpush3.bf16.msra.mxu1 %v631_v16 }
  0x16   :  { %636 = vmatprep.subr.bf16.mxu0 %v635_v19  ;;  %652 = vmatprep.subr.bf16.mxu1 %v635_v19 }
  0x19   :  { %638 = vmatpush3.bf16.msra.mxu0 %v635_v19  ;;  %660 = vmatpush3.bf16.msra.mxu1 %v635_v19 }
  0x1a   :  { %640 = vmatprep.subr.bf16.mxu0 %v639_v22  ;;  %653 = vmatprep.subr.bf16.mxu1 %v639_v22 }
  0x1d   :  { %642 = vmatpush3.bf16.msra.mxu0 %v639_v22  ;;  %661 = vmatpush3.bf16.msra.mxu1 %v639_v22 }
  0x1e   :  { %644 = vmatprep.subr.bf16.mxu0 %v643_v25  ;;  %654 = vmatprep.subr.bf16.mxu1 %v643_v25 }
  0x21   :  { %646 = vmatpush3.bf16.msra.mxu0 %v643_v25  ;;  %662 = vmatpush3.bf16.msra.mxu1 %v643_v25 }
  0x24   :  { %568 = vmatmul.mubr.f32.vlgmr.msra.gmra.mrb[0].mxu0 %v80_v26  ;;  %592 = vmatmul.mubr.f32.vlgmr.msra.gmra.mrb[0].mxu1 %v96_v27 }
  0x25   :  { %570 = vmatprep.mubr.f32.mxu0 %v81_v28  ;;  %594 = vmatprep.mubr.f32.mxu1 %v97_v29 }
  0x28   :  { %571 = vmatmul.mubr.f32.gmra.mrb[2].mxu0 %v82_v30  ;;  %595 = vmatmul.mubr.f32.gmra.mrb[2].mxu1 %v98_v31 }
  0x29   :  { %573 = vmatprep.mubr.f32.mxu0 %v83_v32  ;;  %597 = vmatprep.mubr.f32.mxu1 %v99_v33 }
  0x2c   :  { %574 = vmatmul.mubr.f32.gmra.mrb[4].mxu0 %v84_v34  ;;  %598 = vmatmul.mubr.f32.gmra.mrb[4].mxu1 %v100_v35 }
  0x2d   :  { %576 = vmatprep.mubr.f32.mxu0 %v85_v36  ;;  %600 = vmatprep.mubr.f32.mxu1 %v101_v37 }
  0x30   :  { %577 = vmatmul.mubr.f32.gmra.mrb[6].mxu0 %v86_v38  ;;  %601 = vmatmul.mubr.f32.gmra.mrb[6].mxu1 %v102_v39 }
  0x31   :  { %579 = vmatprep.mubr.f32.mxu0 %v87_v40  ;;  %603 = vmatprep.mubr.f32.mxu1 %v103_v41 }
  0x34   :  { %580 = vmatmul.mubr.f32.gmra.mrb[8].mxu0 %v88_v42  ;;  %604 = vmatmul.mubr.f32.gmra.mrb[8].mxu1 %v104_v43 }
  0x35   :  { %582 = vmatprep.mubr.f32.mxu0 %v89_v44  ;;  %606 = vmatprep.mubr.f32.mxu1 %v105_v45 }
  0x38   :  { %583 = vmatmul.mubr.f32.gmra.mrb[10].mxu0 %v90_v46  ;;  %607 = vmatmul.mubr.f32.gmra.mrb[10].mxu1 %v106_v47 }
  0x39   :  { %585 = vmatprep.mubr.f32.mxu0 %v91_v48  ;;  %609 = vmatprep.mubr.f32.mxu1 %v107_v49 }
  0x3c   :  { %586 = vmatmul.mubr.f32.gmra.mrb[12].mxu0 %v92_v50  ;;  %610 = vmatmul.mubr.f32.gmra.mrb[12].mxu1 %v108_v51 }
  0x3d   :  { %588 = vmatprep.mubr.f32.mxu0 %v93_v52  ;;  %612 = vmatprep.mubr.f32.mxu1 %v109_v53 }
  0x40   :  { %589 = vmatmul.mubr.f32.gmra.mrb[14].mxu0 %v94_v54  ;;  %613 = vmatmul.mubr.f32.gmra.mrb[14].mxu1 %v110_v55 }
  0xf7   :  { %v569_v56 = vpop.f32.mrb[0].mxu0  ;;  %v593_v57 = vpop.f32.mrb[0].mxu1 }
  0xf8   :  { %452 = vst [vmem:[%s920_s2 + $0x8] sm:$0xff] %v569_v56  ;;  %468 = vst [vmem:[%s920_s2 + $0x88] sm:$0xff] %v593_v57  ;;  %v193_v58 = vpop.f32.mrb[1].mxu0  ;;  %v273_v59 = vpop.f32.mrb[1].mxu1 }
  0xf9   :  { %451 = vst [vmem:[%s920_s2] sm:$0xff] %v193_v58  ;;  %467 = vst [vmem:[%s920_s2 + $0x80] sm:$0xff] %v273_v59 }
  0xfb   :  { %v572_v60 = vpop.f32.mrb[2].mxu0  ;;  %v596_v61 = vpop.f32.mrb[2].mxu1 }
  0xfc   :  { %454 = vst [vmem:[%s920_s2 + $0x18] sm:$0xff] %v572_v60  ;;  %470 = vst [vmem:[%s920_s2 + $0x98] sm:$0xff] %v596_v61  ;;  %v203_v62 = vpop.f32.mrb[3].mxu0  ;;  %v283_v63 = vpop.f32.mrb[3].mxu1 }
  0xfd   :  { %453 = vst [vmem:[%s920_s2 + $0x10] sm:$0xff] %v203_v62  ;;  %469 = vst [vmem:[%s920_s2 + $0x90] sm:$0xff] %v283_v63 }
  0xff   :  { %v575_v0 = vpop.f32.mrb[4].mxu0  ;;  %v599_v1 = vpop.f32.mrb[4].mxu1 }
 0x100   :  { %456 = vst [vmem:[%s920_s2 + $0x28] sm:$0xff] %v575_v0  ;;  %472 = vst [vmem:[%s920_s2 + $0xa8] sm:$0xff] %v599_v1  ;;  %v213_v2 = vpop.f32.mrb[5].mxu0  ;;  %v293_v3 = vpop.f32.mrb[5].mxu1 }
 0x101   :  { %455 = vst [vmem:[%s920_s2 + $0x20] sm:$0xff] %v213_v2  ;;  %471 = vst [vmem:[%s920_s2 + $0xa0] sm:$0xff] %v293_v3 }
 0x103   :  { %v578_v4 = vpop.f32.mrb[6].mxu0  ;;  %v602_v5 = vpop.f32.mrb[6].mxu1 }
 0x104   :  { %458 = vst [vmem:[%s920_s2 + $0x38] sm:$0xff] %v578_v4  ;;  %474 = vst [vmem:[%s920_s2 + $0xb8] sm:$0xff] %v602_v5  ;;  %v223_v6 = vpop.f32.mrb[7].mxu0  ;;  %v303_v7 = vpop.f32.mrb[7].mxu1 }
 0x105   :  { %457 = vst [vmem:[%s920_s2 + $0x30] sm:$0xff] %v223_v6  ;;  %473 = vst [vmem:[%s920_s2 + $0xb0] sm:$0xff] %v303_v7 }
 0x107   :  { %v581_v8 = vpop.f32.mrb[8].mxu0  ;;  %v605_v9 = vpop.f32.mrb[8].mxu1 }
 0x108   :  { %460 = vst [vmem:[%s920_s2 + $0x48] sm:$0xff] %v581_v8  ;;  %476 = vst [vmem:[%s920_s2 + $0xc8] sm:$0xff] %v605_v9  ;;  %v233_v10 = vpop.f32.mrb[9].mxu0  ;;  %v313_v11 = vpop.f32.mrb[9].mxu1 }
 0x109   :  { %459 = vst [vmem:[%s920_s2 + $0x40] sm:$0xff] %v233_v10  ;;  %475 = vst [vmem:[%s920_s2 + $0xc0] sm:$0xff] %v313_v11 }
 0x10b   :  { %v584_v12 = vpop.f32.mrb[10].mxu0  ;;  %v608_v13 = vpop.f32.mrb[10].mxu1 }
 0x10c   :  { %462 = vst [vmem:[%s920_s2 + $0x58] sm:$0xff] %v584_v12  ;;  %478 = vst [vmem:[%s920_s2 + $0xd8] sm:$0xff] %v608_v13  ;;  %v243_v14 = vpop.f32.mrb[11].mxu0  ;;  %v323_v15 = vpop.f32.mrb[11].mxu1 }
 0x10d   :  { %461 = vst [vmem:[%s920_s2 + $0x50] sm:$0xff] %v243_v14  ;;  %477 = vst [vmem:[%s920_s2 + $0xd0] sm:$0xff] %v323_v15 }
 0x10f   :  { %v587_v16 = vpop.f32.mrb[12].mxu0  ;;  %v611_v17 = vpop.f32.mrb[12].mxu1 }
 0x110   :  { %464 = vst [vmem:[%s920_s2 + $0x68] sm:$0xff] %v587_v16  ;;  %480 = vst [vmem:[%s920_s2 + $0xe8] sm:$0xff] %v611_v17  ;;  %v253_v18 = vpop.f32.mrb[13].mxu0  ;;  %v333_v19 = vpop.f32.mrb[13].mxu1 }
 0x111   :  { %463 = vst [vmem:[%s920_s2 + $0x60] sm:$0xff] %v253_v18  ;;  %479 = vst [vmem:[%s920_s2 + $0xe0] sm:$0xff] %v333_v19 }
 0x113   :  { %v590_v20 = vpop.f32.mrb[14].mxu0  ;;  %v614_v21 = vpop.f32.mrb[14].mxu1 }
 0x114   :  { %466 = vst [vmem:[%s920_s2 + $0x78] sm:$0xff] %v590_v20  ;;  %482 = vst [vmem:[%s920_s2 + $0xf8] sm:$0xff] %v614_v21  ;;  %v263_v22 = vpop.f32.mrb[15].mxu0  ;;  %v343_v23 = vpop.f32.mrb[15].mxu1 }
 0x115   :  { %465 = vst [vmem:[%s920_s2 + $0x70] sm:$0xff] %v263_v22  ;;  %481 = vst [vmem:[%s920_s2 + $0xf0] sm:$0xff] %v343_v23 }

// kernel: graph_conv.3
= control target key start
LH: loop header
LB: loop body
LE: loop exit
PB: predicated region body
PF: predicated region fallthrough
CT: control target
= control target key end

     0   :  { %s843_s9 = smov 0   ;;  %s845_s10 = smov 0   ;;  %s938_s0 = inlined_call_operand.vmem [shape: f32[2,128,128], index: 0, kind: input, shape index: {}]   ;;  %s939_s1 = inlined_call_operand.vmem [shape: f32[2,128,128], index: 1, kind: input, shape index: {}]   ;;  %s940_s2 = inlined_call_operand.vmem [shape: f32[2,128,128], index: 2, kind: output, shape index: {}]  }
   0x1   :  { %s847_s11 = smov 0  }
   0x2 LB: > { %s31_s12 = sadd.s32 1, %s822_s10  ;;  %p632_p0 = scmp.ge.s32.totalorder %s826_s11, 1  ;;  %s826_s11 = sphi %s847_s11, %s12_s11   ;;  %s822_s10 = sphi %s845_s10, %s942_s10   ;;  %s818_s9 = sphi %s843_s9, %s941_s9  }
   0x3   : > { %p33_p1 = scmp.ge.s32.totalorder %s31_s12, 2  ;;  %p162_p2 = scmp.lt.s32.totalorder %s826_s11, 3 }
   0x5   : > { %s944_s12 = smov (%p33_p1, %s31_s12), 0  ;;  %p163_p3 = pnand %p632_p0, %p162_p2 }
   0x6   : > { %p205_p4 = scmp.lt.s32.totalorder (!%p163_p3), %s818_s9, 1 }
   0x7   : > { %166 = sbr.rel (%p163_p3) target bundleno = 278 (0x116), region = 28 }
   0xe   : > { %s946_s9 = smov (!%p205_p4, %s818_s9), 1 }
   0xf   : > { %s861_s13 = sshll.u32 %s946_s9, 7 }
  0x10   : > { %s867_s16 = scalar_lea.vmem %s939_s1, %s861_s13  ;;  %s879_s19 = scalar_lea.vmem %s938_s0, %s861_s13 }
  0x11   : > { %v289_v0 = vld [vmem:[%s867_s16] sm:$0xff]  ;;  %v290_v1 = vld [vmem:[%s867_s16 + $0x8] sm:$0xff]  ;;  %v291_v2 = vld [vmem:[%s867_s16 + $0x10] sm:$0xff]  ;;  %s911_s22 = scalar_lea.vmem %s940_s2, %s861_s13 }
  0x12   : > { %v732_v3 = vpack.c.bf16 %v290_v1, %v289_v0  ;;  %v292_v4 = vld [vmem:[%s867_s16 + $0x18] sm:$0xff]  ;;  %v293_v6 = vld [vmem:[%s867_s16 + $0x20] sm:$0xff]  ;;  %v294_v7 = vld [vmem:[%s867_s16 + $0x28] sm:$0xff] }
  0x13   : > { %v736_v5 = vpack.c.bf16 %v292_v4, %v291_v2  ;;  %v740_v8 = vpack.c.bf16 %v294_v7, %v293_v6  ;;  %v273_v9 = vld [vmem:[%s879_s19] sm:$0xff]  ;;  %v295_v11 = vld [vmem:[%s867_s16 + $0x30] sm:$0xff]  ;;  %v296_v12 = vld [vmem:[%s867_s16 + $0x38] sm:$0xff] }
  0x14   : > { %733 = vmatprep.subr.bf16.mxu0 %v732_v3  ;;  %764 = vmatprep.subr.bf16.mxu1 %v732_v3  ;;  %v281_v10 = vld [vmem:[%s879_s19 + $0x40] sm:$0xff]  ;;  %v744_v13 = vpack.c.bf16 %v296_v12, %v295_v11  ;;  %v298_v15 = vld [vmem:[%s867_s16 + $0x48] sm:$0xff]  ;;  %v299_v17 = vld [vmem:[%s867_s16 + $0x50] sm:$0xff] }
  0x15   : > { %735 = vmatpush3.bf16.msra.mxu0 %v732_v3  ;;  %772 = vmatpush3.bf16.msra.mxu1 %v732_v3  ;;  %v297_v14 = vld [vmem:[%s867_s16 + $0x40] sm:$0xff]  ;;  %v300_v18 = vld [vmem:[%s867_s16 + $0x58] sm:$0xff]  ;;  %v302_v21 = vld [vmem:[%s867_s16 + $0x68] sm:$0xff] }
  0x16   : > { %737 = vmatprep.subr.bf16.mxu0 %v736_v5  ;;  %765 = vmatprep.subr.bf16.mxu1 %v736_v5  ;;  %v748_v16 = vpack.c.bf16 %v298_v15, %v297_v14  ;;  %v752_v19 = vpack.c.bf16 %v300_v18, %v299_v17  ;;  %v301_v20 = vld [vmem:[%s867_s16 + $0x60] sm:$0xff]  ;;  %v303_v23 = vld [vmem:[%s867_s16 + $0x70] sm:$0xff]  ;;  %v304_v24 = vld [vmem:[%s867_s16 + $0x78] sm:$0xff] }
  0x17   : > { %708 = vmatprep.mubr.f32.mxu0 %v273_v9  ;;  %720 = vmatprep.mubr.f32.mxu1 %v281_v10  ;;  %v756_v22 = vpack.c.bf16 %v302_v21, %v301_v20  ;;  %v760_v25 = vpack.c.bf16 %v304_v24, %v303_v23  ;;  %v274_v26 = vld [vmem:[%s879_s19 + $0x8] sm:$0xff]  ;;  %v275_v28 = vld [vmem:[%s879_s19 + $0x10] sm:$0xff]  ;;  %v276_v30 = vld [vmem:[%s879_s19 + $0x18] sm:$0xff] }
  0x18   : > { %v282_v27 = vld [vmem:[%s879_s19 + $0x48] sm:$0xff]  ;;  %v283_v29 = vld [vmem:[%s879_s19 + $0x50] sm:$0xff]  ;;  %v284_v31 = vld [vmem:[%s879_s19 + $0x58] sm:$0xff] }
  0x19   : > { %739 = vmatpush3.bf16.msra.mxu0 %v736_v5  ;;  %773 = vmatpush3.bf16.msra.mxu1 %v736_v5  ;;  %v277_v32 = vld [vmem:[%s879_s19 + $0x20] sm:$0xff]  ;;  %v278_v34 = vld [vmem:[%s879_s19 + $0x28] sm:$0xff]  ;;  %v279_v36 = vld [vmem:[%s879_s19 + $0x30] sm:$0xff] }
  0x1a   : > { %741 = vmatprep.subr.bf16.mxu0 %v740_v8  ;;  %766 = vmatprep.subr.bf16.mxu1 %v740_v8  ;;  %v285_v33 = vld [vmem:[%s879_s19 + $0x60] sm:$0xff]  ;;  %v286_v35 = vld [vmem:[%s879_s19 + $0x68] sm:$0xff]  ;;  %v287_v37 = vld [vmem:[%s879_s19 + $0x70] sm:$0xff] }
  0x1b   : > { %v280_v38 = vld [vmem:[%s879_s19 + $0x38] sm:$0xff] }
  0x1c   : > { %v288_v39 = vld [vmem:[%s879_s19 + $0x78] sm:$0xff] }
  0x1d   : > { %743 = vmatpush3.bf16.msra.mxu0 %v740_v8  ;;  %774 = vmatpush3.bf16.msra.mxu1 %v740_v8 }
  0x1e   : > { %745 = vmatprep.subr.bf16.mxu0 %v744_v13  ;;  %767 = vmatprep.subr.bf16.mxu1 %v744_v13 }
  0x21   : > { %747 = vmatpush3.bf16.msra.mxu0 %v744_v13  ;;  %775 = vmatpush3.bf16.msra.mxu1 %v744_v13 }
  0x22   : > { %749 = vmatprep.subr.bf16.mxu0 %v748_v16  ;;  %768 = vmatprep.subr.bf16.mxu1 %v748_v16 }
  0x25   : > { %751 = vmatpush3.bf16.msra.mxu0 %v748_v16  ;;  %776 = vmatpush3.bf16.msra.mxu1 %v748_v16 }
  0x26   : > { %753 = vmatprep.subr.bf16.mxu0 %v752_v19  ;;  %769 = vmatprep.subr.bf16.mxu1 %v752_v19 }
  0x29   : > { %755 = vmatpush3.bf16.msra.mxu0 %v752_v19  ;;  %777 = vmatpush3.bf16.msra.mxu1 %v752_v19 }
  0x2a   : > { %757 = vmatprep.subr.bf16.mxu0 %v756_v22  ;;  %770 = vmatprep.subr.bf16.mxu1 %v756_v22 }
  0x2d   : > { %759 = vmatpush3.bf16.msra.mxu0 %v756_v22  ;;  %778 = vmatpush3.bf16.msra.mxu1 %v756_v22 }
  0x2e   : > { %761 = vmatprep.subr.bf16.mxu0 %v760_v25  ;;  %771 = vmatprep.subr.bf16.mxu1 %v760_v25 }
  0x31   : > { %763 = vmatpush3.bf16.msra.mxu0 %v760_v25  ;;  %779 = vmatpush3.bf16.msra.mxu1 %v760_v25 }
  0x34   : > { %709 = vmatmul.mubr.f32.vlgmr.msra.gmra.mrb[0].mxu0 %v274_v26  ;;  %721 = vmatmul.mubr.f32.vlgmr.msra.gmra.mrb[0].mxu1 %v282_v27 }
  0x35   : > { %711 = vmatprep.mubr.f32.mxu0 %v275_v28  ;;  %723 = vmatprep.mubr.f32.mxu1 %v283_v29 }
  0x38   : > { %712 = vmatmul.mubr.f32.gmra.mrb[2].mxu0 %v276_v30  ;;  %724 = vmatmul.mubr.f32.gmra.mrb[2].mxu1 %v284_v31 }
  0x39   : > { %714 = vmatprep.mubr.f32.mxu0 %v277_v32  ;;  %726 = vmatprep.mubr.f32.mxu1 %v285_v33 }
  0x3c   : > { %715 = vmatmul.mubr.f32.gmra.mrb[4].mxu0 %v278_v34  ;;  %727 = vmatmul.mubr.f32.gmra.mrb[4].mxu1 %v286_v35 }
  0x3d   : > { %717 = vmatprep.mubr.f32.mxu0 %v279_v36  ;;  %729 = vmatprep.mubr.f32.mxu1 %v287_v37 }
  0x40   : > { %718 = vmatmul.mubr.f32.gmra.mrb[6].mxu0 %v280_v38  ;;  %730 = vmatmul.mubr.f32.gmra.mrb[6].mxu1 %v288_v39 }
 0x107   : > { %v710_v40 = vpop.f32.mrb[0].mxu0  ;;  %v722_v41 = vpop.f32.mrb[0].mxu1 }
 0x108   : > { %502 = vst [vmem:[%s911_s22 + $0x8] sm:$0xff] %v710_v40  ;;  %510 = vst [vmem:[%s911_s22 + $0x48] sm:$0xff] %v722_v41  ;;  %v371_v42 = vpop.f32.mrb[1].mxu0  ;;  %v411_v43 = vpop.f32.mrb[1].mxu1 }
 0x109   : > { %501 = vst [vmem:[%s911_s22] sm:$0xff] %v371_v42  ;;  %509 = vst [vmem:[%s911_s22 + $0x40] sm:$0xff] %v411_v43 }
 0x10b   : > { %v713_v44 = vpop.f32.mrb[2].mxu0  ;;  %v725_v45 = vpop.f32.mrb[2].mxu1 }
 0x10c   : > { %504 = vst [vmem:[%s911_s22 + $0x18] sm:$0xff] %v713_v44  ;;  %512 = vst [vmem:[%s911_s22 + $0x58] sm:$0xff] %v725_v45  ;;  %v381_v46 = vpop.f32.mrb[3].mxu0  ;;  %v421_v47 = vpop.f32.mrb[3].mxu1 }
 0x10d   : > { %503 = vst [vmem:[%s911_s22 + $0x10] sm:$0xff] %v381_v46  ;;  %511 = vst [vmem:[%s911_s22 + $0x50] sm:$0xff] %v421_v47 }
 0x10f   : > { %v716_v48 = vpop.f32.mrb[4].mxu0  ;;  %v728_v49 = vpop.f32.mrb[4].mxu1 }
 0x110   : > { %506 = vst [vmem:[%s911_s22 + $0x28] sm:$0xff] %v716_v48  ;;  %514 = vst [vmem:[%s911_s22 + $0x68] sm:$0xff] %v728_v49  ;;  %v391_v50 = vpop.f32.mrb[5].mxu0  ;;  %v431_v51 = vpop.f32.mrb[5].mxu1 }
 0x111   : > { %505 = vst [vmem:[%s911_s22 + $0x20] sm:$0xff] %v391_v50  ;;  %513 = vst [vmem:[%s911_s22 + $0x60] sm:$0xff] %v431_v51 }
 0x113   : > { %v719_v52 = vpop.f32.mrb[6].mxu0  ;;  %v731_v53 = vpop.f32.mrb[6].mxu1 }
 0x114   : > { %508 = vst [vmem:[%s911_s22 + $0x38] sm:$0xff] %v719_v52  ;;  %516 = vst [vmem:[%s911_s22 + $0x78] sm:$0xff] %v731_v53  ;;  %v401_v54 = vpop.f32.mrb[7].mxu0  ;;  %v441_v55 = vpop.f32.mrb[7].mxu1 }
 0x115   : > { %507 = vst [vmem:[%s911_s22 + $0x30] sm:$0xff] %v401_v54  ;;  %515 = vst [vmem:[%s911_s22 + $0x70] sm:$0xff] %v441_v55 }
 0x116 PF: > { %s12_s11 = sadd.s32 1, %s826_s11   ;;  %s941_s9 = smov %s822_s10 }
 0x117   : > { %p9_p5 = scmp.ge.s32.totalorder %s12_s11, 4   ;;  %s942_s10 = smov %s944_s12 }
 0x119   :  { %11 = sbr.rel (!%p9_p5) target bundleno = 2 (0x2), region = 69 }

</bundles_post_ra>
